<compile_context>
chip_gen: v6e
topology: v6e:2x2x1
jax: 0.10.0
libtpu: 0.0.40
codegen_flags: <defaults>
</compile_context>

<pallas_src>
import functools

import jax
import jax.numpy as jnp
from jax.experimental import pallas as pl
from jax.experimental.pallas import tpu as pltpu


# ---------------------------------------------------------------------------
# helpers from the original codebase
# ---------------------------------------------------------------------------
def to_sigm(x):
    return (x + 1.0) / 2.0


def to_tanh(x):
    return x * 2.0 - 1.0


def _round_up(x, m):
    return (x + m - 1) // m * m


def _lane_tile(hw, bytes_per_lane, vmem_budget=8 << 20, cap=16384):
    """Largest 128-multiple lane tile whose double-buffered working set fits a
    conservative VMEM budget (safe vs v5e 16 MiB / v6e 32 MiB / v7x 32 MiB
    scoped defaults)."""
    t = (vmem_budget // (2 * max(bytes_per_lane, 1))) // 128 * 128
    t = max(128, min(t, cap))
    t = min(t, _round_up(hw, 128))
    return t


# ---------------------------------------------------------------------------
# Kernel 1 (fused): 4-tap bilinear warp of the stacked channels + background
#                   compositing of the rgb rows (rows 0..n_rgb-1) in the
#                   epilogue, written as two sublane-aligned full-tile stores.
#
#   warped[c, p]      = sum_k w[k, p] * taps[k, c, p]          (f32 accumulate)
#   out[rgb, p]       = (warped[rgb,p] + 1)*segm + 2*bg*(1-segm) - 1
#   out[other, p]     = warped[other, p]
# ---------------------------------------------------------------------------
def _warp_composite_kernel(taps_ref, w_ref, bg_ref, out_ref, *, n_rgb, segm_row):
    w = w_ref[...]                                            # (4, T) f32
    warped = taps_ref[0].astype(jnp.float32) * w[0:1, :]      # (Cp, T)
    warped = warped + taps_ref[1].astype(jnp.float32) * w[1:2, :]
    warped = warped + taps_ref[2].astype(jnp.float32) * w[2:3, :]
    warped = warped + taps_ref[3].astype(jnp.float32) * w[3:4, :]

    seg = warped[segm_row:segm_row + 1, :]                    # (1, T) warped segm
    bg8 = bg_ref[...].astype(jnp.float32)                     # (8, T) (rows>=3 are pad)
    top = warped[0:8, :]                                      # first sublane tile
    comp8 = (top + 1.0) * seg + 2.0 * bg8 * (1.0 - seg) - 1.0
    row = jax.lax.broadcasted_iota(jnp.int32, comp8.shape, 0)
    # single full-tile store for rows 0..7 (rgb composited, rest passthrough)
    out_ref[0:8, :] = jnp.where(row < n_rgb, comp8, top)
    if out_ref.shape[0] > 8:
        out_ref[8:, :] = warped[8:, :]                        # aligned full tiles


def warp_composite(taps, wgt, bg8, *, n_rgb=3, segm_row=3, lane_tile=None):
    """taps: (B,4,Cp,HWp) bf16, wgt: (B,4,HWp) f32, bg8: (B,8,HWp) bf16
       -> (B,Cp,HWp) f32.  Rows [0:n_rgb] are composited over the background,
       every other row is the plain 4-tap bilinear warp."""
    B, K, Cp, HWp = taps.shape
    assert K == 4 and Cp >= 8 and Cp % 8 == 0 and n_rgb <= 8 and segm_row < 8

    # conservative (VMEM-padded) bytes per output lane: taps + wgt + bg + out
    bpl = 8 * Cp + 32 + 32 + 4 * Cp
    if lane_tile is None:
        lane_tile = _lane_tile(HWp, bpl)
        while HWp % lane_tile:
            lane_tile -= 128
        if lane_tile <= 0:       # callers should pad HW to a 128 multiple
            lane_tile = HWp
    T = lane_tile
    assert HWp % T == 0

    kern = functools.partial(_warp_composite_kernel, n_rgb=n_rgb,
                             segm_row=segm_row)
    nbytes = taps.size * 2 + wgt.size * 4 + bg8.size * 2 + B * Cp * HWp * 4
    flops = B * HWp * (8 * Cp + 48)
    return pl.pallas_call(
        kern,
        out_shape=jax.ShapeDtypeStruct((B, Cp, HWp), jnp.float32),
        grid=(B, HWp // T),
        in_specs=[
            pl.BlockSpec((None, K, Cp, T), lambda b, t: (b, 0, 0, t)),
            pl.BlockSpec((None, K, T), lambda b, t: (b, 0, t)),
            pl.BlockSpec((None, 8, T), lambda b, t: (b, 0, t)),
        ],
        out_specs=pl.BlockSpec((None, Cp, T), lambda b, t: (b, 0, t)),
        compiler_params=pltpu.CompilerParams(
            dimension_semantics=("parallel", "parallel"),
            vmem_limit_bytes=32 * 1024 * 1024),
        cost_estimate=pl.CostEstimate(flops=flops, transcendentals=0,
                                      bytes_accessed=nbytes),
    )(taps, wgt, bg8)


# ---------------------------------------------------------------------------
# Kernel 2: standalone background compositing (test / no-augmentation path).
#           segm is a (1, T) block broadcast in-kernel (no jnp.repeat copy).
# ---------------------------------------------------------------------------
def _composite_kernel(rgb_ref, segm_ref, bg_ref, out_ref):
    seg = segm_ref[...]                                       # (1, T)
    out_ref[...] = ((rgb_ref[...] + 1.0) * seg
                    + 2.0 * bg_ref[...] * (1.0 - seg) - 1.0)


def composite(rgb, segm, bg):
    """rgb/bg: (B,3,H,W), segm: (B,1,H,W) ->
       to_tanh(to_sigm(rgb)*segm + bg*(1-segm))  as (B,3,H,W) f32."""
    B, C, H, W = rgb.shape
    HW = H * W
    bpl = 4 * 8 * 4                       # 4 operands, sublane-padded to 8 rows
    T = _lane_tile(HW, bpl)
    HWp = _round_up(HW, T)

    def prep(x, c):
        x = x.reshape(B, c, HW).astype(jnp.float32)
        if HWp != HW:
            x = jnp.pad(x, ((0, 0), (0, 0), (0, HWp - HW)))
        return x

    rgb2, seg2, bg2 = prep(rgb, 3), prep(segm, 1), prep(bg, 3)
    nbytes = (rgb2.size + seg2.size + bg2.size) * 4 + B * 3 * HWp * 4
    out = pl.pallas_call(
        _composite_kernel,
        out_shape=jax.ShapeDtypeStruct((B, 3, HWp), jnp.float32),
        grid=(B, HWp // T),
        in_specs=[
            pl.BlockSpec((None, 3, T), lambda b, t: (b, 0, t)),
            pl.BlockSpec((None, 1, T), lambda b, t: (b, 0, t)),
            pl.BlockSpec((None, 3, T), lambda b, t: (b, 0, t)),
        ],
        out_specs=pl.BlockSpec((None, 3, T), lambda b, t: (b, 0, t)),
        compiler_params=pltpu.CompilerParams(
            dimension_semantics=("parallel", "parallel"),
            vmem_limit_bytes=32 * 1024 * 1024),
        cost_estimate=pl.CostEstimate(flops=6 * B * 3 * HWp, transcendentals=0,
                                      bytes_accessed=nbytes),
    )(rgb2, seg2, bg2)
    return out[:, :, :HW].reshape(B, 3, H, W)


# ---------------------------------------------------------------------------
# glue: deterministic RandomAffine parameters -> per-pixel 4-tap gather params
# (vectorized, O(HW); no dense matrix, no scatter-add)
# ---------------------------------------------------------------------------
def _affine_matrix(angle_deg, tx, ty, scale, H, W):
    theta = jnp.deg2rad(angle_deg)
    a = jnp.cos(theta) * scale
    b = -jnp.sin(theta) * scale
    c = jnp.sin(theta) * scale
    d = jnp.cos(theta) * scale
    cx = (W - 1) * 0.5
    cy = (H - 1) * 0.5
    t0 = cx - (a * cx + b * cy) + tx
    t1 = cy - (c * cx + d * cy) + ty
    return jnp.array([[a, b, t0], [c, d, t1], [0.0, 0.0, 1.0]], jnp.float32)


def _bilinear_gather_params(M, H, W):
    """For every output pixel: 4 source-row indices (into the flattened HW
    axis) and 4 bilinear weights (zero-padding outside the image).
    Returns idx (4, HW) i32, wgt (4, HW) f32."""
    Minv = jnp.linalg.inv(M)
    ys = jax.lax.broadcasted_iota(jnp.float32, (H, W), 0).reshape(-1)
    xs = jax.lax.broadcasted_iota(jnp.float32, (H, W), 1).reshape(-1)
    sx = Minv[0, 0] * xs + Minv[0, 1] * ys + Minv[0, 2]
    sy = Minv[1, 0] * xs + Minv[1, 1] * ys + Minv[1, 2]
    x0 = jnp.floor(sx)
    y0 = jnp.floor(sy)
    wx = sx - x0
    wy = sy - y0
    HW = H * W
    idxs, wgts = [], []
    for dx, dy, w in ((0, 0, (1 - wx) * (1 - wy)),
                      (1, 0, wx * (1 - wy)),
                      (0, 1, (1 - wx) * wy),
                      (1, 1, wx * wy)):
        xi = x0 + dx
        yi = y0 + dy
        valid = (xi >= 0) & (xi < W) & (yi >= 0) & (yi < H)
        idxs.append(jnp.clip(yi * W + xi, 0, HW - 1).astype(jnp.int32))
        wgts.append(jnp.where(valid, w, 0.0).astype(jnp.float32))
    return jnp.stack(idxs, axis=0), jnp.stack(wgts, axis=0)


def _gather_taps_rows(stacked_t, idx):
    """Row-style gather: stacked_t (B, HW, Cp) channel-minor bf16,
    idx (B, 4, HWp) i32  ->  taps (B, 4, Cp, HWp) bf16.
    Each index moves Cp contiguous elements (fast row gather) instead of the
    per-element lane-minor gather of the previous version."""
    def one(st, ix):                       # st (HW, Cp), ix (4, HWp)
        k, hwp = ix.shape
        g = jnp.take(st, ix.reshape(-1), axis=0)          # (4*HWp, Cp)
        return g.reshape(k, hwp, st.shape[1])
    taps_t = jax.vmap(one)(stacked_t, idx)                # (B, 4, HWp, Cp)
    # TODO(synk): a raw lax.gather with offset_dims placed before the index
    # batch dims (and/or pair gathers exploiting the dx in {0,1} adjacency)
    # could elide this transpose / halve the index count.
    return jnp.transpose(taps_t, (0, 1, 3, 2))            # (B, 4, Cp, HWp)


# ---------------------------------------------------------------------------
# TrainingModule.forward equivalent
# ---------------------------------------------------------------------------
def training_module_forward(data_dict, target_dict, ndesc_batch,
                            phase="train", key=None):
    data_dict = dict(data_dict)
    target_dict = dict(target_dict)

    B, _, H, W = data_dict["raster_mask"].shape
    HW = H * W

    target_dict["real_rgb"] = target_dict["real_rgb_nos"]

    # TODO(synk): PCDConverter, draping_network, Renderer.render_dict,
    # generator, discriminator_list and criterion_list are externally injected
    # sub-modules with no definition in this file; they are not reproduced.

    # ndesc_stack.generate_batch(pids).permute(0, 2, 1)
    data_dict["ndesc"] = jnp.transpose(ndesc_batch, (0, 2, 1))

    if "background" in data_dict:
        bg_img = data_dict["background"].astype(jnp.float32)
    else:
        bg_img = jnp.zeros_like(target_dict["real_rgb"], dtype=jnp.float32)

    if phase == "train":
        assert key is not None
        # kornia.augmentation.RandomAffine(degrees=±20, translate=0.15,
        # scale=(0.8,1.2)) with deterministic parameters drawn in-script.
        k1, k2, k3, k4 = jax.random.split(key, 4)
        ang = jax.random.uniform(k1, (B,), minval=-20.0, maxval=20.0)
        tx = jax.random.uniform(k2, (B,), minval=-0.15, maxval=0.15) * W
        ty = jax.random.uniform(k3, (B,), minval=-0.15, maxval=0.15) * H
        sc = jax.random.uniform(k4, (B,), minval=0.8, maxval=1.2)
        M = jax.vmap(lambda a, x, y, s: _affine_matrix(a, x, y, s, H, W))(
            ang, tx, ty, sc)
        idx, wgt = jax.vmap(lambda m: _bilinear_gather_params(m, H, W))(M)

        # channel order: rgb rows at sublane offset 0, segm at row 3, so every
        # kernel slice stays inside the first (8,128) vreg tile; pad C to 8k.
        items = [target_dict["real_rgb"], target_dict["real_segm"],
                 data_dict["raster_mask"], data_dict["smpl_mask"],
                 data_dict["raster_features"]]
        ncs = [it.shape[1] for it in items]
        C = sum(ncs)
        Cp = _round_up(max(C, 8), 8)
        n_rgb, segm_row = ncs[0], ncs[0]

        bpl = 8 * Cp + 32 + 32 + 4 * Cp
        T = _lane_tile(HW, bpl)
        HWp = _round_up(HW, T)           # guard against non-128-multiple HW

        # channel-minor bf16 stack: halves HBM traffic of the dominant taps
        # tensor and makes the warp gather a contiguous row gather.
        items_t = [jnp.transpose(it, (0, 2, 3, 1)).reshape(B, HW, -1)
                   for it in items]
        stacked_t = jnp.concatenate(items_t, axis=-1).astype(jnp.bfloat16)
        if Cp != C:
            stacked_t = jnp.pad(stacked_t, ((0, 0), (0, 0), (0, Cp - C)))

        if HWp != HW:
            idx = jnp.pad(idx, ((0, 0), (0, 0), (0, HWp - HW)))
            wgt = jnp.pad(wgt, ((0, 0), (0, 0), (0, HWp - HW)))

        taps = _gather_taps_rows(stacked_t, idx)             # (B,4,Cp,HWp) bf16

        bg8 = bg_img.reshape(B, 3, HW)
        bg8 = jnp.pad(bg8, ((0, 0), (0, 5), (0, HWp - HW))).astype(jnp.bfloat16)

        # fused: 4-tap weighted sum (f32 accumulate) + background compositing
        out = warp_composite(taps, wgt, bg8, n_rgb=n_rgb, segm_row=segm_row,
                             lane_tile=T)                    # (B,Cp,HWp) f32
        out = out[:, :, :HW].reshape(B, Cp, H, W)

        parts, st = [], 0
        for nc in ncs:
            parts.append(out[:, st:st + nc])
            st += nc
        real_rgb_comp, real_segm, raster_mask, smpl_mask, raster_features = parts
        data_dict["raster_mask"] = raster_mask
        data_dict["raster_features"] = raster_features
        data_dict["smpl_mask"] = smpl_mask
        target_dict["real_segm"] = real_segm
        target_dict["real_rgb"] = real_rgb_comp   # already composited in-kernel
    else:
        # no augmentation: standalone composite kernel
        target_dict["real_rgb"] = composite(
            target_dict["real_rgb"], target_dict["real_segm"], bg_img)

    disc_in = dict()
    disc_in.update(data_dict)
    disc_in.update(target_dict)

    if phase == "test":
        return disc_in, dict(), dict()

    criterion_in = dict(disc_in)
    losses_G_dict = dict()   # criterion_list is external (see TODO above)
    return criterion_in, losses_G_dict


# ---------------------------------------------------------------------------
if __name__ == "__main__":
    key = jax.random.PRNGKey(0)
    ks = jax.random.split(key, 12)

    B, imsize, ntex, nverts = 2, 16, 8, 64
    H = W = imsize
    HW = imsize * imsize

    data_dict = {
        "raster_mask": (jax.random.uniform(ks[0], (B, 1, imsize, imsize)) > 0.5
                        ).astype(jnp.float32),
        "raster_features": jax.random.normal(ks[1], (B, ntex, imsize, imsize),
                                             dtype=jnp.float32),
        "smpl_mask": (jax.random.uniform(ks[2], (B, 1, imsize, imsize)) > 0.5
                      ).astype(jnp.float32),
        "background": jax.random.uniform(ks[3], (B, 3, imsize, imsize),
                                         dtype=jnp.float32),
        "seq": jnp.arange(B, dtype=jnp.int32),
    }
    target_dict = {
        "real_rgb_nos": jnp.tanh(jax.random.normal(ks[4], (B, 3, imsize, imsize),
                                                   dtype=jnp.float32)),
        "real_segm": (jax.random.uniform(ks[5], (B, 1, imsize, imsize)) > 0.3
                      ).astype(jnp.float32),
    }
    ndesc_batch = jax.random.normal(ks[6], (B, nverts, ntex), dtype=jnp.float32)

    # train path (row-gather + fused warp/composite Pallas kernel)
    criterion_in, losses = training_module_forward(
        data_dict, target_dict, ndesc_batch, phase="train", key=ks[7])
    jax.block_until_ready(criterion_in["real_rgb"])

    # test path (standalone composite Pallas kernel)
    disc_in, _, _ = training_module_forward(
        data_dict, target_dict, ndesc_batch, phase="test")
    jax.block_until_ready(disc_in["real_rgb"])

    # ---- check 1: fused warp+composite kernel vs plain-jnp reference -------
    Cp = 16
    n_rgb = segm_row = 3
    taps = jax.random.normal(ks[8], (B, 4, Cp, HW),
                             dtype=jnp.float32).astype(jnp.bfloat16)
    wgt = jax.random.uniform(ks[9], (B, 4, HW), dtype=jnp.float32)
    bg8 = jnp.pad(jax.random.uniform(ks[10], (B, 3, HW), dtype=jnp.float32),
                  ((0, 0), (0, 5), (0, 0))).astype(jnp.bfloat16)
    got = warp_composite(taps, wgt, bg8, n_rgb=n_rgb, segm_row=segm_row)
    warped_ref = jnp.sum(taps.astype(jnp.float32) * wgt[:, :, None, :], axis=1)
    segm_ref = warped_ref[:, segm_row:segm_row + 1]
    bg_ref = bg8[:, :3].astype(jnp.float32)
    comp_ref = to_tanh(to_sigm(warped_ref[:, :n_rgb]) * segm_ref
                       + bg_ref * (1.0 - segm_ref))
    ref = warped_ref.at[:, :n_rgb].set(comp_ref)
    assert jnp.allclose(got, ref, atol=1e-4, rtol=1e-4), "warp_composite mismatch"

    # ---- check 2: row-style gather + kernel vs element-gather reference ----
    ang = jnp.array([7.5, -12.0], jnp.float32)
    tx = jnp.array([1.3, -2.1], jnp.float32)
    ty = jnp.array([-0.7, 2.4], jnp.float32)
    sc = jnp.array([0.9, 1.15], jnp.float32)
    M = jax.vmap(lambda a, x, y, s: _affine_matrix(a, x, y, s, H, W))(
        ang, tx, ty, sc)
    idx2, wgt2 = jax.vmap(lambda m: _bilinear_gather_params(m, H, W))(M)
    stacked_t = jax.random.normal(ks[11], (B, HW, Cp),
                                  dtype=jnp.float32).astype(jnp.bfloat16)
    taps2 = _gather_taps_rows(stacked_t, idx2)
    out2 = warp_composite(taps2, wgt2, jnp.zeros((B, 8, HW), jnp.bfloat16),
                          n_rgb=n_rgb, segm_row=segm_row)
    stacked_cm = jnp.transpose(stacked_t, (0, 2, 1)).astype(jnp.float32)
    taps_ref = jnp.take_along_axis(
        jnp.broadcast_to(stacked_cm[:, None], (B, 4, Cp, HW)),
        jnp.broadcast_to(idx2[:, :, None, :], (B, 4, Cp, HW)), axis=3)
    warped_ref2 = jnp.sum(taps_ref * wgt2[:, :, None, :], axis=1)
    seg2 = warped_ref2[:, segm_row:segm_row + 1]
    ref2 = warped_ref2.at[:, :n_rgb].set(
        to_tanh(to_sigm(warped_ref2[:, :n_rgb]) * seg2))
    assert jnp.allclose(out2, ref2, atol=1e-4, rtol=1e-4), "warp path mismatch"

    # ---- check 3: standalone composite kernel vs plain-jnp reference -------
    got3 = composite(target_dict["real_rgb_nos"], target_dict["real_segm"],
                     data_dict["background"])
    ref3 = to_tanh(to_sigm(target_dict["real_rgb_nos"]) * target_dict["real_segm"]
                   + data_dict["background"] * (1.0 - target_dict["real_segm"]))
    assert jnp.allclose(got3, ref3, atol=1e-5, rtol=1e-5), "composite mismatch"

    jax.block_until_ready(got3)
    print("KERNEL_OK")
</pallas_src>

<mosaic_0001>
module attributes {stable_mosaic.version = 11 : i64} {
  func.func @_warp_composite_kernel(%arg0: i32, %arg1: i32, %arg2: memref<1x4x16x256xbf16, #tpu.memory_space<vmem>>, %arg3: memref<1x4x256xf32, #tpu.memory_space<vmem>>, %arg4: memref<1x8x256xbf16, #tpu.memory_space<vmem>>, %arg5: memref<1x16x256xf32, #tpu.memory_space<vmem>>) attributes {dimension_semantics = [#tpu.dimension_semantics<parallel>, #tpu.dimension_semantics<parallel>], iteration_bounds = array<i64: 2, 1>, scalar_prefetch = 0 : i64, scratch_operands = 0 : i64, tpu.core_type = #tpu.core_type<tc>, window_params = [{transform_indices = @transform_0, window_bounds = array<i64: 1, 4, 16, 256>}, {transform_indices = @transform_1, window_bounds = array<i64: 1, 4, 256>}, {transform_indices = @transform_2, window_bounds = array<i64: 1, 8, 256>}, {transform_indices = @transform_3, window_bounds = array<i64: 1, 16, 256>}]} {
    %c0 = arith.constant 0 : index
    %c0_0 = arith.constant 0 : index
    %c0_1 = arith.constant 0 : index
    %0 = vector.load %arg3[%c0, %c0_0, %c0_1] : memref<1x4x256xf32, #tpu.memory_space<vmem>>, vector<1x4x256xf32>
    %1 = vector.shape_cast %0 : vector<1x4x256xf32> to vector<4x256xf32>
    %c0_2 = arith.constant 0 : index
    %c0_3 = arith.constant 0 : index
    %c0_4 = arith.constant 0 : index
    %c0_5 = arith.constant 0 : index
    %2 = vector.load %arg2[%c0_2, %c0_3, %c0_4, %c0_5] : memref<1x4x16x256xbf16, #tpu.memory_space<vmem>>, vector<1x1x16x256xbf16>
    %3 = vector.shape_cast %2 : vector<1x1x16x256xbf16> to vector<16x256xbf16>
    %4 = arith.extf %3 : vector<16x256xbf16> to vector<16x256xf32>
    %5 = vector.extract_strided_slice %1 {offsets = [0, 0], sizes = [1, 256], strides = [1, 1]} : vector<4x256xf32> to vector<1x256xf32>
    %6 = vector.broadcast %5 : vector<1x256xf32> to vector<16x256xf32>
    %7 = arith.mulf %4, %6 : vector<16x256xf32>
    %c0_6 = arith.constant 0 : index
    %c1 = arith.constant 1 : index
    %c0_7 = arith.constant 0 : index
    %c0_8 = arith.constant 0 : index
    %8 = vector.load %arg2[%c0_6, %c1, %c0_7, %c0_8] : memref<1x4x16x256xbf16, #tpu.memory_space<vmem>>, vector<1x1x16x256xbf16>
    %9 = vector.shape_cast %8 : vector<1x1x16x256xbf16> to vector<16x256xbf16>
    %10 = arith.extf %9 : vector<16x256xbf16> to vector<16x256xf32>
    %11 = vector.extract_strided_slice %1 {offsets = [1, 0], sizes = [1, 256], strides = [1, 1]} : vector<4x256xf32> to vector<1x256xf32>
    %12 = vector.broadcast %11 : vector<1x256xf32> to vector<16x256xf32>
    %13 = arith.mulf %10, %12 : vector<16x256xf32>
    %14 = arith.addf %7, %13 : vector<16x256xf32>
    %c0_9 = arith.constant 0 : index
    %c2 = arith.constant 2 : index
    %c0_10 = arith.constant 0 : index
    %c0_11 = arith.constant 0 : index
    %15 = vector.load %arg2[%c0_9, %c2, %c0_10, %c0_11] : memref<1x4x16x256xbf16, #tpu.memory_space<vmem>>, vector<1x1x16x256xbf16>
    %16 = vector.shape_cast %15 : vector<1x1x16x256xbf16> to vector<16x256xbf16>
    %17 = arith.extf %16 : vector<16x256xbf16> to vector<16x256xf32>
    %18 = vector.extract_strided_slice %1 {offsets = [2, 0], sizes = [1, 256], strides = [1, 1]} : vector<4x256xf32> to vector<1x256xf32>
    %19 = vector.broadcast %18 : vector<1x256xf32> to vector<16x256xf32>
    %20 = arith.mulf %17, %19 : vector<16x256xf32>
    %21 = arith.addf %14, %20 : vector<16x256xf32>
    %c0_12 = arith.constant 0 : index
    %c3 = arith.constant 3 : index
    %c0_13 = arith.constant 0 : index
    %c0_14 = arith.constant 0 : index
    %22 = vector.load %arg2[%c0_12, %c3, %c0_13, %c0_14] : memref<1x4x16x256xbf16, #tpu.memory_space<vmem>>, vector<1x1x16x256xbf16>
    %23 = vector.shape_cast %22 : vector<1x1x16x256xbf16> to vector<16x256xbf16>
    %24 = arith.extf %23 : vector<16x256xbf16> to vector<16x256xf32>
    %25 = vector.extract_strided_slice %1 {offsets = [3, 0], sizes = [1, 256], strides = [1, 1]} : vector<4x256xf32> to vector<1x256xf32>
    %26 = vector.broadcast %25 : vector<1x256xf32> to vector<16x256xf32>
    %27 = arith.mulf %24, %26 : vector<16x256xf32>
    %28 = arith.addf %21, %27 : vector<16x256xf32>
    %29 = vector.extract_strided_slice %28 {offsets = [3, 0], sizes = [1, 256], strides = [1, 1]} : vector<16x256xf32> to vector<1x256xf32>
    %c0_15 = arith.constant 0 : index
    %c0_16 = arith.constant 0 : index
    %c0_17 = arith.constant 0 : index
    %30 = vector.load %arg4[%c0_15, %c0_16, %c0_17] : memref<1x8x256xbf16, #tpu.memory_space<vmem>>, vector<1x8x256xbf16>
    %31 = vector.shape_cast %30 : vector<1x8x256xbf16> to vector<8x256xbf16>
    %32 = arith.extf %31 : vector<8x256xbf16> to vector<8x256xf32>
    %33 = vector.extract_strided_slice %28 {offsets = [0, 0], sizes = [8, 256], strides = [1, 1]} : vector<16x256xf32> to vector<8x256xf32>
    %cst = arith.constant 1.000000e+00 : f32
    %34 = vector.broadcast %cst : f32 to vector<8x256xf32>
    %35 = arith.addf %33, %34 : vector<8x256xf32>
    %36 = vector.broadcast %29 : vector<1x256xf32> to vector<8x256xf32>
    %37 = arith.mulf %35, %36 : vector<8x256xf32>
    %cst_18 = arith.constant 2.000000e+00 : f32
    %38 = vector.broadcast %cst_18 : f32 to vector<8x256xf32>
    %39 = arith.mulf %38, %32 : vector<8x256xf32>
    %cst_19 = arith.constant 1.000000e+00 : f32
    %40 = vector.broadcast %cst_19 : f32 to vector<1x256xf32>
    %41 = arith.subf %40, %29 : vector<1x256xf32>
    %42 = vector.broadcast %41 : vector<1x256xf32> to vector<8x256xf32>
    %43 = arith.mulf %39, %42 : vector<8x256xf32>
    %44 = arith.addf %37, %43 : vector<8x256xf32>
    %cst_20 = arith.constant 1.000000e+00 : f32
    %45 = vector.broadcast %cst_20 : f32 to vector<8x256xf32>
    %46 = arith.subf %44, %45 : vector<8x256xf32>
    %47 = tpu.iota {dimensions = array<i32: 0>} : vector<8x256xi32>
    %c3_i32 = arith.constant 3 : i32
    %48 = vector.broadcast %c3_i32 : i32 to vector<8x256xi32>
    %49 = arith.cmpi slt, %47, %48 : vector<8x256xi32>
    %50 = arith.select %49, %46, %33 : vector<8x256xi1>, vector<8x256xf32>
    %c0_21 = arith.constant 0 : index
    %c0_22 = arith.constant 0 : index
    %c0_23 = arith.constant 0 : index
    %51 = vector.load %arg5[%c0_21, %c0_22, %c0_23] : memref<1x16x256xf32, #tpu.memory_space<vmem>>, vector<1x8x256xf32>
    %52 = vector.shape_cast %51 : vector<1x8x256xf32> to vector<8x256xf32>
    %53 = vector.shape_cast %50 : vector<8x256xf32> to vector<1x8x256xf32>
    tpu.vector_store %arg5[%c0_21, %c0_22, %c0_23], %53 {strides = array<i32>} : memref<1x16x256xf32, #tpu.memory_space<vmem>>, vector<1x8x256xf32>,
    %54 = vector.extract_strided_slice %28 {offsets = [8, 0], sizes = [8, 256], strides = [1, 1]} : vector<16x256xf32> to vector<8x256xf32>
    %c0_24 = arith.constant 0 : index
    %c8 = arith.constant 8 : index
    %c0_25 = arith.constant 0 : index
    %55 = vector.load %arg5[%c0_24, %c8, %c0_25] : memref<1x16x256xf32, #tpu.memory_space<vmem>>, vector<1x8x256xf32>
    %56 = vector.shape_cast %55 : vector<1x8x256xf32> to vector<8x256xf32>
    %57 = vector.shape_cast %54 : vector<8x256xf32> to vector<1x8x256xf32>
    tpu.vector_store %arg5[%c0_24, %c8, %c0_25], %57 {strides = array<i32>} : memref<1x16x256xf32, #tpu.memory_space<vmem>>, vector<1x8x256xf32>,
    return
  }
  func.func @transform_0(%arg0: i32, %arg1: i32) -> (i32, i32, i32, i32) {
    %c0_i32 = arith.constant 0 : i32
    %c0_i32_0 = arith.constant 0 : i32
    %c0_i32_1 = arith.constant 0 : i32
    return %arg0, %c0_i32, %c0_i32_0, %arg1 : i32, i32, i32, i32
  }
  func.func @transform_1(%arg0: i32, %arg1: i32) -> (i32, i32, i32) {
    %c0_i32 = arith.constant 0 : i32
    %c0_i32_0 = arith.constant 0 : i32
    return %arg0, %c0_i32, %arg1 : i32, i32, i32
  }
  func.func @transform_2(%arg0: i32, %arg1: i32) -> (i32, i32, i32) {
    %c0_i32 = arith.constant 0 : i32
    %c0_i32_0 = arith.constant 0 : i32
    return %arg0, %c0_i32, %arg1 : i32, i32, i32
  }
  func.func @transform_3(%arg0: i32, %arg1: i32) -> (i32, i32, i32) {
    %c0_i32 = arith.constant 0 : i32
    %c0_i32_0 = arith.constant 0 : i32
    return %arg0, %c0_i32, %arg1 : i32, i32, i32
  }
}

</mosaic_0001>

<bundles_post_ra>
// kernel: tpu_custom_call.1
= control target key start
LH: loop header
LB: loop body
LE: loop exit
PB: predicated region body
PF: predicated region fallthrough
CT: control target
= control target key end

     0   :  { %s1156_s0 = inlined_call_operand.hbm [shape: bf16[2,4,16,256], index: 0, kind: input, shape index: {}]   ;;  %s1157_s1 = inlined_call_operand.hbm [shape: f32[2,4,256], index: 1, kind: input, shape index: {}]   ;;  %s1158_s2 = inlined_call_operand.hbm [shape: bf16[2,8,256], index: 2, kind: input, shape index: {}]   ;;  %s1159_s3 = inlined_call_operand.hbm [shape: f32[2,16,256], index: 3, kind: output, shape index: {}]  }
   0x1   :  { %1161 = sst [smem:[#allocation12_spill]] %s1156_s0 }
   0x2   :  { %1162 = sst [smem:[#allocation13_spill]] %s1157_s1 }
   0x3   :  { %1163 = sst [smem:[#allocation14_spill]] %s1158_s2 }
   0x4   :  { %8 = vsyncpa [#allocation3], 0 }
   0x5   :  { %10 = vsyncpa [#allocation3 + $0x1], 0 }
   0x6   :  { %11 = vsyncpa [#allocation6], 0 }
   0x7   :  { %13 = vsyncpa [#allocation6 + $0x1], 0 }
   0x8   :  { %14 = vsyncpa [#allocation4], 0 }
   0x9   :  { %16 = vsyncpa [#allocation4 + $0x1], 0  ;;  %s924_s12 = smov 0   ;;  %s926_s13 = smov 0  }
   0xa   :  { %s928_s14 = smov 0   ;;  %s930_s15 = smov 0  }
   0xb   :  { %s932_s16 = smov 0   ;;  %s934_s17 = smov 0  }
   0xc LB: > { %s955_s18 = sadd.s32 4294967295, %s894_s17   ;;  %s616_s19 = sadd.s32 4294967294, %s894_s17   ;;  %s894_s17 = sphi %s934_s17, %s22_s17   ;;  %s890_s16 = sphi %s932_s16, %s1179_s16   ;;  %s886_s15 = sphi %s930_s15, %s1178_s15   ;;  %s882_s14 = sphi %s928_s14, %s1177_s14   ;;  %s878_s13 = sphi %s926_s13, %s1176_s13   ;;  %s874_s12 = sphi %s924_s12, %s1175_s12  }
   0xd   : > { %s34_s20 = sadd.s32 1, %s890_s16  ;;  %s43_s21 = sadd.s32 1, %s882_s14 }
   0xe   : > { %p36_p0 = scmp.ge.s32.totalorder %s34_s20, 2  ;;  %p50_p1 = scmp.ne.s32.totalorder %s882_s14, %s878_s13 }
   0xf   : > { %p51_p2 = scmp.eq.s32.totalorder %s894_s17, 0  ;;  %p56_p3 = scmp.ne.s32.totalorder %s878_s13, %s874_s12 }
  0x10   : > { %s1181_s20 = smov (%p36_p0, %s34_s20), 0  ;;  %p57_p5 = scmp.eq.s32.totalorder %s955_s18, 0 }
  0x11   : > { %p967_p4 = por %p51_p2, %p50_p1  ;;  %s38_s23 = ssub.s32 %s890_s16, %s1181_s20 }
  0x12   : > { %p138_p6 = scmp.eq.s32.totalorder %s955_s18, 1  ;;  %p41_p7 = scmp.eq.s32.totalorder %s38_s23, 0 }
  0x13   : > { %p975_p8 = por %p57_p5, %p56_p3  ;;  %p144_p10 = scmp.eq.s32.totalorder %s616_s19, 1 }
  0x14   : > { %p979_p9 = por %p138_p6, %p50_p1  ;;  %p672_p13 = scmp.lt.s32.totalorder %s894_s17, 2 }
  0x15   : > { %s984_s26 = scalar_select %p41_p7, %s882_s14, %s43_s21  }
  0x16   : > { %p986_p11 = por %p144_p10, %p56_p3  ;;  %s993_s28 = sand.u32 1, %s882_s14  }
  0x17   : > { %s187_s29 = sand.u32 1, %s894_s17   ;;  %s1160_s30 = sshll.u32 %s993_s28, 3 }
  0x18   : > { %p999_p0 = pnand %p672_p13, %p967_p4  ;;  %s647_s5 = sshll.u32 %s890_s16, 7 }
  0x19   : > { %s1169_s1 = sld [smem:[#allocation13_spill]]  ;;  %s191_s9 = scalar_lea.vmem [#allocation5], %s1160_s30 }
  0x1a   : > { %s201_s10 = sshll.u32 %s191_s9, 4  ;;  %s1170_s2 = sld [smem:[#allocation14_spill]]  ;;  %s202_s10 = int_to_ptr.vmem [resolvable:$true] %s201_s10 }
  0x1b   : > { %s1014_s22 = scalar_lea.sflag [#allocation6], %s187_s29  ;;  %p728_p1 = pneg %p999_p0 }
  0x1c   : > { %s739_s23 = scalar_lea.vmem %s202_s10, 128  ;;  %s896_s6 = smov [#allocation5]  }
  0x1d   : > { %p740_p2 = scmp.ne.s32.totalorder %s202_s10, %s739_s23  ;;  %s744_s7 = sshll.u32 %s896_s6, 4  ;;  %s745_s7 = int_to_ptr.vmem [resolvable:$false] %s744_s7 }
  0x1e   : > { %s746_s9 = scalar_lea.vmem %s745_s7, 256  ;;  %p747_p5 = scmp.lt.s32.totalorder %s202_s10, %s745_s7 }
  0x1f   : > { %s199_s8 = scalar_lea.hbm %s1169_s1, %s647_s5  ;;  %p742_p3 = pnand %p740_p2, %p728_p1 }
  0x20   : > { %s1012_s21 = scalar_lea.hbm %s1170_s2, %s647_s5  ;;  %p748_p6 = scmp.lt.s32.totalorder %s746_s9, %s739_s23 }
  0x21   : > { %p743_p4 = pneg %p742_p3 }
  0x22   : > { %p749_p7 = por %p748_p6, %p747_p5 }
  0x24   : > { %p750_p10 = pnand %p749_p7, %p743_p4 }
  0x26   : > { %753 = shalt.err (!%p750_p10)
}
  0x27   : > { %664 = dma.hbm_to_vmem [thread:$0]  (!%p999_p0), %s199_s8, 128, %s202_s10, %s1014_s22  }
  0x28   : > { %p628_p13 = scmp.ge.s32.totalorder %s894_s17, 1  ;;  %p227_p2 = scmp.lt.s32.totalorder %s894_s17, 3 }
  0x29   : > { %s619_s5 = sshll.u32 %s993_s28, 6  ;;  %s646_s11 = sshll.u32 %s890_s16, 10 }
  0x2a   : > { %p1026_p3 = pnand %p628_p13, %p227_p2  ;;  %s1172_s0 = sld [smem:[#allocation12_spill]] }
  0x2b   : > { %s168_s7 = scalar_lea.vmem [#allocation2], %s619_s5  ;;  %s165_s30 = scalar_lea.sflag [#allocation3], %s993_s28 }
  0x2c   : > { %s177_s9 = sshll.u32 %s168_s7, 4  ;;  %s897_s8 = smov [#allocation2]   ;;  %s178_s9 = int_to_ptr.vmem [resolvable:$true] %s177_s9 }
  0x2d   : > { %s767_s1 = scalar_lea.vmem %s178_s9, 1024  ;;  %s772_s10 = sshll.u32 %s897_s8, 4  ;;  %s773_s10 = int_to_ptr.vmem [resolvable:$false] %s772_s10 }
  0x2e   : > { %p768_p4 = scmp.ne.s32.totalorder %s178_s9, %s767_s1  ;;  %s774_s2 = scalar_lea.vmem %s773_s10, 2048 }
  0x2f   : > { %p775_p7 = scmp.lt.s32.totalorder %s178_s9, %s773_s10  ;;  %p776_p10 = scmp.lt.s32.totalorder %s774_s2, %s767_s1 }
  0x30   : > { %s176_s6 = scalar_lea.hbm %s1172_s0, %s646_s11  ;;  %p770_p5 = pnand %p768_p4, %p728_p1 }
  0x31   : > { %p777_p13 = por %p776_p10, %p775_p7 }
  0x32   : > { %p771_p6 = pneg %p770_p5 }
  0x34   : > { %p778_p2 = pnand %p777_p13, %p771_p6 }
  0x36   : > { %781 = shalt.err (!%p778_p2)
}
  0x37   : > { %s898_s11 = smov 128   ;;  %s899_s5 = smov 8  }
  0x38   : > { %661 = dma.hbm_to_vmem [thread:$0]  (!%p999_p0), %s176_s6, 1024, %s178_s9, %s165_s30, %s898_s11, %s898_s11, %s899_s5  }
  0x39   : > { %s1173_s19 = sshll.u32 %s993_s28, 3  ;;  %s900_s1 = smov [#allocation7]  }
  0x3a   : > { %s212_s23 = scalar_lea.vmem [#allocation7], %s1173_s19  ;;  %s800_s2 = sshll.u32 %s900_s1, 4  ;;  %s801_s2 = int_to_ptr.vmem [resolvable:$false] %s800_s2 }
  0x3b   : > { %s222_s7 = sshll.u32 %s212_s23, 4  ;;  %s802_s8 = scalar_lea.vmem %s801_s2, 256  ;;  %s223_s7 = int_to_ptr.vmem [resolvable:$true] %s222_s7 }
  0x3c   : > { %s795_s0 = scalar_lea.vmem %s223_s7, 128  ;;  %p803_p6 = scmp.lt.s32.totalorder %s223_s7, %s801_s2 }
  0x3d   : > { %p796_p4 = scmp.ne.s32.totalorder %s223_s7, %s795_s0  ;;  %p804_p7 = scmp.lt.s32.totalorder %s802_s8, %s795_s0 }
  0x3f   : > { %p798_p5 = pnand %p796_p4, %p728_p1  ;;  %p805_p10 = por %p804_p7, %p803_p6 }
  0x41   : > { %p799_p12 = pneg %p798_p5 }
  0x43   : > { %p806_p13 = pnand %p805_p10, %p799_p12 }
  0x45   : > { %809 = shalt.err (!%p806_p13)
}
  0x46   : > { %667 = dma.hbm_to_vmem [thread:$0]  (!%p999_p0), %s1012_s21, 128, %s223_s7, %s1014_s22  }
  0x47   : > { %231 = sbr.rel (%p1026_p3) target bundleno = 124 (0x7c), region = 32  ;;  %s1053_s28 = sand.u32 (!%p1026_p3), 1, %s878_s13  }
  0x48   : > { %s629_s30 = sshll.u32 (!%p1026_p3), %s1053_s28, 6  ;;  %s234_s6 = scalar_lea.sflag (!%p1026_p3), [#allocation3], %s1053_s28 }
  0x49   : > { %s1057_s0 = scalar_lea.vmem (!%p1026_p3), [#allocation2], %s629_s30 }
  0x4c   : > { %861 = dma.done.wait (%p975_p8), %s234_s6, 1024  }
  0x4d   : > { %863 = vsyncadd (%p975_p8), %s234_s6, 4294966272  ;;  %s242_s4 = sand.u32 1, %s955_s18   ;;  %s630_s21 = sshll.u32 %s1053_s28, 3 }
  0x4e   : > { %s243_s22 = scalar_lea.sflag [#allocation6], %s242_s4  ;;  %s246_s29 = scalar_lea.vmem [#allocation5], %s630_s21 }
  0x4f   : > { %865 = dma.done.wait (%p975_p8), %s243_s22, 256  }
  0x50   : > { %867 = vsyncadd (%p975_p8), %s243_s22, 4294967040  ;;  %v300_v0 = vlaneseq  ;;  %v292_v6 = vld [vmem:[%s246_s29] sm:$0xff]  ;;  %v633_v8 = vld [vmem:[%s1057_s0 + $0x10] sm:$0xff]  ;;  %s255_s18 = scalar_lea.vmem [#allocation7], %s630_s21  ;;  %s632_s24 = sshll.u32 %s1053_s28, 5 }
  0x51   : > { %v293_v7 = vld [vmem:[%s1057_s0] sm:$0xff]  ;;  %v325_v14 = vunpack.c.l.bf16 %v633_v8  ;;  %v637_v17 = vld [vmem:[%s1057_s0 + $0x30] sm:$0xff]  ;;  %v326_v33 = vunpack.c.h.bf16 %v633_v8  ;;  %v294_v35 = vld [vmem:[%s1057_s0 + $0x8] sm:$0xff]  ;;  %s287_s9 = scalar_lea.vmem [#allocation8], %s632_s24  ;;  %s649_s11 = sshll.u32 %s886_s15, 9 }
  0x52   : > { %v1069_v1 = vshrl.u32 %v300_v0, 7  ;;  %v295_v12 = vunpack.c.l.bf16 %v293_v7  ;;  %v635_v16 = vld [vmem:[%s1057_s0 + $0x20] sm:$0xff]  ;;  %v421_v18 = vld [vmem:[%s255_s18] sm:$0xff]  ;;  %v391_v21 = vunpack.c.l.bf16 %v637_v17  ;;  %v296_v29 = vunpack.c.h.bf16 %v293_v7  ;;  %v636_v45 = vld [vmem:[%s1057_s0 + $0x28] sm:$0xff]  ;;  %s479_s10 = sshll.u32 %s287_s9, 4  ;;  %s1106_s23 = scalar_lea.hbm %s1159_s3, %s649_s11  ;;  %s1101_s10 = int_to_ptr.vmem [resolvable:$true] %s479_s10 }
  0x53   : > { %v358_v19 = vunpack.c.l.bf16 %v635_v16  ;;  %v422_v25 = vunpack.c.l.bf16 %v421_v18  ;;  %v634_v40 = vld [vmem:[%s1057_s0 + $0x18] sm:$0xff]  ;;  %v359_v43 = vunpack.c.h.bf16 %v635_v16  ;;  %v392_v47 = vunpack.c.h.bf16 %v637_v17  ;;  %s464_s15 = scalar_lea.sflag [#allocation4], %s1053_s28  ;;  %s810_s7 = scalar_lea.vmem %s1101_s10, 512 }
  0x54   : > { %v302_v2 = vsub.s32 0, %v1069_v1  ;;  %v331_v3 = vsub.s32 1, %v1069_v1  ;;  %v364_v4 = vsub.s32 2, %v1069_v1  ;;  %v1075_v5 = vsub.s32 3, %v1069_v1  ;;  %v638_v54 = vld [vmem:[%s1057_s0 + $0x38] sm:$0xff]  ;;  %p811_p8 = scmp.ne.s32.totalorder %s1101_s10, %s810_s7  ;;  %s901_s1 = smov [#allocation8]  }
  0x55   : > { %v306_v9 = vsub.s32 4, %v1069_v1  ;;  %v335_v10 = vsub.s32 5, %v1069_v1  ;;  %v368_v11 = vsub.s32 6, %v1069_v1  ;;  %v401_v26 = vsub.s32 7, %v1069_v1  ;;  %s814_s2 = sshll.u32 %s901_s1, 4  ;;  %s815_s2 = int_to_ptr.vmem [resolvable:$false] %s814_s2 }
  0x56   : > { %v303_v13 = vrot.slane %v292_v6, %v302_v2  ;;  %v332_v15 = vrot.slane %v292_v6, %v331_v3  ;;  %v365_v20 = vrot.slane %v292_v6, %v364_v4  ;;  %v398_v22 = vrot.slane %v292_v6, %v1075_v5  ;;  %p812_p12 = pnand %p811_p8, %p979_p9  ;;  %s816_s8 = scalar_lea.vmem %s815_s2, 1024 }
  0x57   : > { %v307_v30 = vrot.slane %v292_v6, %v306_v9  ;;  %v336_v34 = vrot.slane %v292_v6, %v335_v10  ;;  %v436_v38 = vmul.f32 2.0, %v422_v25  ;;  %v369_v44 = vrot.slane %v292_v6, %v368_v11  ;;  %p817_p1 = scmp.lt.s32.totalorder %s1101_s10, %s815_s2  ;;  %p818_p3 = scmp.lt.s32.totalorder %s816_s8, %s810_s7 }
  0x58   : > { %v313_v23 = vrot.slane %v303_v13, %v302_v2  ;;  %v342_v24 = vrot.slane %v332_v15, %v331_v3  ;;  %v375_v27 = vrot.slane %v365_v20, %v364_v4  ;;  %v408_v28 = vrot.slane %v398_v22, %v1075_v5  ;;  %p813_p0 = pneg %p812_p12 }
  0x59   : > { %v317_v39 = vrot.slane %v307_v30, %v302_v2  ;;  %v346_v42 = vrot.slane %v336_v34, %v331_v3  ;;  %v402_v48 = vrot.slane %v292_v6, %v401_v26  ;;  %v297_v49 = vunpack.c.l.bf16 %v294_v35  ;;  %p819_p2 = por %p818_p3, %p817_p1 }
  0x5a   : > { %v318_v31 = vmul.f32 %v313_v23, %v295_v12  ;;  %v347_v32 = vmul.f32 %v342_v24, %v325_v14  ;;  %v380_v36 = vmul.f32 %v375_v27, %v358_v19  ;;  %v413_v37 = vmul.f32 %v408_v28, %v391_v21 }
  0x5b   : > { %v319_v46 = vmul.f32 %v317_v39, %v296_v29  ;;  %v348_v51 = vmul.f32 %v346_v42, %v326_v33  ;;  %v379_v52 = vrot.slane %v369_v44, %v364_v4  ;;  %v327_v53 = vunpack.c.l.bf16 %v634_v40  ;;  %p820_p4 = pnand %p819_p2, %p813_p0 }
  0x5c   : > { %v351_v41 = vadd.f32 %v347_v32, %v318_v31  ;;  %v412_v55 = vrot.slane %v402_v48, %v1075_v5  ;;  %v423_v56 = vunpack.c.h.bf16 %v421_v18  ;;  %v320_v57 = vmul.f32 %v313_v23, %v297_v49 }
  0x5d   : > { %v360_v58 = vunpack.c.l.bf16 %v636_v45  ;;  %v352_v60 = vadd.f32 %v348_v51, %v319_v46  ;;  %v381_v61 = vmul.f32 %v379_v52, %v359_v43  ;;  %v349_v62 = vmul.f32 %v342_v24, %v327_v53 }
  0x5e   : > { %v384_v50 = vadd.f32 %v380_v36, %v351_v41  ;;  %v414_v63 = vmul.f32 %v412_v55, %v392_v47  ;;  %v393_v2 = vunpack.c.l.bf16 %v638_v54  ;;  %v298_v3 = vunpack.c.h.bf16 %v294_v35 }
  0x5f   : > { %v382_v0 = vmul.f32 %v375_v27, %v360_v58  ;;  %v385_v8 = vadd.f32 %v381_v61, %v352_v60  ;;  %v353_v9 = vadd.f32 %v349_v62, %v320_v57  ;;  %v328_v12 = vunpack.c.h.bf16 %v634_v40 }
  0x60   : > { %v417_v59 = vadd.f32 %v413_v37, %v384_v50  ;;  %v415_v10 = vmul.f32 %v408_v28, %v393_v2  ;;  %v321_v11 = vmul.f32 %v317_v39, %v298_v3  ;;  %v361_v16 = vunpack.c.h.bf16 %v636_v45 }
  0x61   : > { %v418_v15 = vadd.f32 %v414_v63, %v385_v8  ;;  %v437_v17 = vmul.f32 2.0, %v423_v56  ;;  %v386_v18 = vadd.f32 %v382_v0, %v353_v9  ;;  %v350_v19 = vmul.f32 %v346_v42, %v328_v12 }
  0x62   : > { %v424_v6 = vadd.f32 1.0, %v417_v59  ;;  %v429_v7 = vrot.slane %v417_v59, %v1075_v5  ;;  %v438_v4 = vsub.f32 1.0, %v417_v59  ;;  %v394_v20 = vunpack.c.h.bf16 %v638_v54 }
  0x63   : > { %v425_v22 = vadd.f32 1.0, %v418_v15  ;;  %v433_v23 = vrot.slane %v418_v15, %v1075_v5  ;;  %v439_v24 = vsub.f32 1.0, %v418_v15  ;;  %v419_v25 = vadd.f32 %v415_v10, %v386_v18 }
  0x64   : > { %v434_v13 = vmul.f32 %v429_v7, %v424_v6  ;;  %v443_v14 = vrot.slane %v438_v4, %v1075_v5  ;;  %v354_v26 = vadd.f32 %v350_v19, %v321_v11  ;;  %v383_v27 = vmul.f32 %v379_v52, %v361_v16 }
  0x65   : > { %v416_v28 = vmul.f32 %v412_v55, %v394_v20  ;;  %v435_v30 = vmul.f32 %v433_v23, %v425_v22  ;;  %v447_v31 = vrot.slane %v439_v24, %v1075_v5  ;;  %vm456_vm0 = vcmp.lt.s32.totalorder %v1069_v1, 3  ;;  %461 = vst [vmem:[%s287_s9 + $0x10] sm:$0xff] %v419_v25 }
  0x66   : > { %v448_v21 = vmul.f32 %v443_v14, %v436_v38  ;;  %v387_v32 = vadd.f32 %v383_v27, %v354_v26 }
  0x67   : > { %v449_v34 = vmul.f32 %v447_v31, %v437_v17 }
  0x68   : > { %v450_v29 = vadd.f32 %v448_v21, %v434_v13  ;;  %v420_v35 = vadd.f32 %v416_v28, %v387_v32 }
  0x69   : > { %v451_v37 = vadd.f32 %v449_v34, %v435_v30 }
  0x6a   : > { %v639_v33 = vadd.f32 -1.0, %v450_v29  ;;  %462 = vst [vmem:[%s287_s9 + $0x18] sm:$0xff] %v420_v35 }
  0x6b   : > { %v640_v5 = vadd.f32 -1.0, %v451_v37 }
  0x6c   : > { %v457_v36 = vsel %vm456_vm0, %v639_v33, %v417_v59 }
  0x6d   : > { %459 = vst [vmem:[%s287_s9] sm:$0xff] %v457_v36  ;;  %v458_v38 = vsel %vm456_vm0, %v640_v5, %v418_v15 }
  0x6e   : > { %460 = vst [vmem:[%s287_s9 + $0x8] sm:$0xff] %v458_v38 }
  0x6f   : > { %823 = shalt.err (!%p820_p4)
}
  0x70   : > { %s824_s30 = scalar_lea.hbm %s1106_s23, 512  ;;  %s828_s4 = scalar_lea.hbm %s1159_s3, 1024 }
  0x71   : > { %p825_p5 = scmp.ne.s32.totalorder %s1106_s23, %s824_s30  ;;  %p829_p10 = scmp.lt.s32.totalorder %s1106_s23, %s1159_s3 }
  0x72   : > { %p830_p13 = scmp.lt.s32.totalorder %s828_s4, %s824_s30 }
  0x73   : > { %p826_p6 = pnand %p825_p5, %p979_p9 }
  0x74   : > { %p831_p8 = por %p830_p13, %p829_p10 }
  0x75   : > { %p827_p7 = pneg %p826_p6 }
  0x77   : > { %p832_p12 = pnand %p831_p8, %p827_p7 }
  0x79   : > { %835 = shalt.err (!%p832_p12)
}
  0x7a   : > { %s902_s29 = smov 256   ;;  %s903_s18 = smov 16  }
  0x7b   : > { %656 = dma.vmem_to_hbm [thread:$0]  (%p979_p9), %s1101_s10, 512, %s1106_s23, %s464_s15, %s902_s29, %s902_s29, %s903_s18  }
  0x7c PF: > { %s494_s24 = sand.u32 1, %s874_s12   ;;  %p1174_p0 = scmp.ge.s32.totalorder %s894_s17, 2 }
  0x7d   : > { %s495_s9 = scalar_lea.sflag [#allocation4], %s494_s24 }
  0x7e   : > { %p669_p1 = pnand %p1174_p0, %p986_p11 }
  0x80   : > { %p670_p3 = pneg %p669_p1 }
  0x82   : > { %869 = dma.done.wait (%p670_p3), %s495_s9, 512  }
  0x83   : > { %871 = vsyncadd (%p670_p3), %s495_s9, 4294966784  ;;  %s22_s17 = sadd.s32 1, %s894_s17   ;;  %s1175_s12 = smov %s878_s13 }
  0x84   : > { %p19_p2 = scmp.ge.s32.totalorder %s22_s17, 4   ;;  %s1176_s13 = smov %s882_s14 }
  0x85   : > { %s1177_s14 = smov %s984_s26  ;;  %s1178_s15 = smov %s890_s16 }
  0x86   : > { %s1179_s16 = smov %s1181_s20  ;;  %21 = sbr.rel (!%p19_p2) target bundleno = 12 (0xc), region = 104 }
  0x8b   :  { %500 = vsyncpa [#allocation3], 1 }
  0x8c   :  { %502 = vsyncpa [#allocation3 + $0x1], 1 }
  0x8d   :  { %503 = vsyncpa [#allocation6], 1 }
  0x8e   :  { %505 = vsyncpa [#allocation6 + $0x1], 1 }
  0x8f   :  { %506 = vsyncpa [#allocation4], 1 }
  0x90   :  { %508 = vsyncpa [#allocation4 + $0x1], 1 }

</bundles_post_ra>
